<compile_context>
chip_gen: v7x
topology: tpu7x:2x2x1
jax: 0.10.0
libtpu: 0.0.40
codegen_flags: <defaults>
</compile_context>

<pallas_src>
import functools

import jax
import jax.numpy as jnp
from jax.experimental import pallas as pl
from jax.experimental.pallas import tpu as pltpu


def _round_up(x, m):
    return ((x + m - 1) // m) * m


def _layernorm_f32(x, gamma, beta, *, d_real, d_pad, eps):
    """Two-pass LayerNorm over the last (lane) dim; padded lanes masked out."""
    inv_d = jnp.float32(1.0 / d_real)
    mean = jnp.sum(x, axis=-1, keepdims=True) * inv_d
    xc = x - mean
    if d_real != d_pad:
        lane = jax.lax.broadcasted_iota(jnp.int32, x.shape, 1)
        xc = jnp.where(lane < d_real, xc, 0.0)
    var = jnp.sum(xc * xc, axis=-1, keepdims=True) * inv_d
    xn = xc * jax.lax.rsqrt(var + eps)
    return xn * gamma + beta


def prenorm_linear_kernel(x_ref, gamma_ref, beta_ref, w_ref, b_ref, o_ref, *,
                          d_real, d_pad, eps):
    """Fast path: W fully resident, 1-D grid over row tiles."""
    x = x_ref[...].astype(jnp.float32)
    y = _layernorm_f32(x,
                       gamma_ref[...].astype(jnp.float32),
                       beta_ref[...].astype(jnp.float32),
                       d_real=d_real, d_pad=d_pad, eps=eps)
    w = w_ref[...]
    out = jnp.dot(y.astype(w.dtype), w, preferred_element_type=jnp.float32)
    out = out + b_ref[...].astype(jnp.float32)
    o_ref[...] = out.astype(o_ref.dtype)


def prenorm_linear_tiled_kernel(x_ref, gamma_ref, beta_ref, w_ref, b_ref, o_ref,
                                y_ref, *, d_real, d_pad, eps):
    """Large-D path: column-tiled W; normalized y cached once per row tile."""
    j = pl.program_id(1)

    @pl.when(j == 0)
    def _():
        x = x_ref[...].astype(jnp.float32)
        y_ref[...] = _layernorm_f32(x,
                                    gamma_ref[...].astype(jnp.float32),
                                    beta_ref[...].astype(jnp.float32),
                                    d_real=d_real, d_pad=d_pad, eps=eps)

    w = w_ref[...]
    out = jnp.dot(y_ref[...].astype(w.dtype), w, preferred_element_type=jnp.float32)
    out = out + b_ref[...].astype(jnp.float32)
    o_ref[...] = out.astype(o_ref.dtype)


def prenorm_linear(x, gamma, beta, w, b, *, tm=256, tn=256, eps=1e-5,
                   vmem_budget_bytes=40 * 1024 * 1024):
    """PreNorm with fn = Linear(dim, dim): fn(LayerNorm(x)).

    x: (B, N, D); gamma, beta, b: (D,); w: (D, D) stored (D_in, D_out).
    """
    B, N, D = x.shape
    M = B * N

    # Lane-dense feature dim (multiple of 128) -> unmasked vst + full MXU tiles.
    Dp = _round_up(D, 128)

    # Row tile: 16-row aligned for sub-32-bit x (2 rows / sublane), 8 for f32.
    row_align = 8 if x.dtype.itemsize >= 4 else 16
    tm = max(row_align, min(tm, _round_up(M, row_align)))
    tm = _round_up(tm, row_align)
    Mp = _round_up(M, tm)
    # Keep >= 2 parallel row tiles when possible so v7x's 2 TensorCores both work.
    if Mp // tm == 1 and tm >= 2 * row_align:
        tm = _round_up(tm // 2, row_align)
        Mp = _round_up(M, tm)

    # Pad only when actually needed (aligned shapes go straight through — the
    # padded slab otherwise doubles HBM traffic on this bandwidth-bound kernel).
    x2 = x.reshape(M, D)
    if (Mp, Dp) != (M, D):
        x2 = jnp.zeros((Mp, Dp), x.dtype).at[:M, :D].set(x2)
    if Dp != D:
        # In a real model these padded parameters would be built once at setup.
        gamma2 = jnp.zeros((1, Dp), gamma.dtype).at[0, :D].set(gamma)
        beta2 = jnp.zeros((1, Dp), beta.dtype).at[0, :D].set(beta)
        w2 = jnp.zeros((Dp, Dp), w.dtype).at[:D, :D].set(w)
        b2 = jnp.zeros((1, Dp), b.dtype).at[0, :D].set(b)
    else:
        gamma2 = gamma.reshape(1, D)
        beta2 = beta.reshape(1, D)
        w2 = w
        b2 = b.reshape(1, D)

    # Can W live fully resident in VMEM (double-buffer reservations included)?
    resident_bytes = (
        2 * Dp * Dp * w.dtype.itemsize        # W
        + 2 * tm * Dp * x.dtype.itemsize      # x row tiles
        + 2 * tm * Dp * x.dtype.itemsize      # output tiles
        + 4 * tm * Dp                         # f32 intermediates headroom
    )
    full_resident = resident_bytes <= vmem_budget_bytes

    if full_resident:
        grid = (Mp // tm,)
        kernel = functools.partial(prenorm_linear_kernel,
                                   d_real=D, d_pad=Dp, eps=eps)
        out = pl.pallas_call(
            kernel,
            out_shape=jax.ShapeDtypeStruct((Mp, Dp), x.dtype),
            grid_spec=pltpu.PrefetchScalarGridSpec(
                num_scalar_prefetch=0,
                grid=grid,
                in_specs=[
                    pl.BlockSpec((tm, Dp), lambda i: (i, 0)),   # x row tile
                    pl.BlockSpec((1, Dp), lambda i: (0, 0)),    # gamma
                    pl.BlockSpec((1, Dp), lambda i: (0, 0)),    # beta
                    pl.BlockSpec((Dp, Dp), lambda i: (0, 0)),   # W (resident)
                    pl.BlockSpec((1, Dp), lambda i: (0, 0)),    # bias
                ],
                out_specs=pl.BlockSpec((tm, Dp), lambda i: (i, 0)),
            ),
            compiler_params=pltpu.CompilerParams(
                dimension_semantics=("parallel",),
                vmem_limit_bytes=48 * 1024 * 1024,
            ),
        )(x2, gamma2, beta2, w2, b2)
    else:
        # Column-tiled fallback for very large D (keeps v7x's 64 MiB VMEM happy).
        tn = min(tn, Dp)
        while Dp % tn != 0:
            tn -= 128
        grid = (Mp // tm, Dp // tn)
        kernel = functools.partial(prenorm_linear_tiled_kernel,
                                   d_real=D, d_pad=Dp, eps=eps)
        out = pl.pallas_call(
            kernel,
            out_shape=jax.ShapeDtypeStruct((Mp, Dp), x.dtype),
            grid_spec=pltpu.PrefetchScalarGridSpec(
                num_scalar_prefetch=0,
                grid=grid,
                in_specs=[
                    pl.BlockSpec((tm, Dp), lambda i, j: (i, 0)),   # x row tile
                    pl.BlockSpec((1, Dp), lambda i, j: (0, 0)),    # gamma
                    pl.BlockSpec((1, Dp), lambda i, j: (0, 0)),    # beta
                    pl.BlockSpec((Dp, tn), lambda i, j: (0, j)),   # W column tile
                    pl.BlockSpec((1, tn), lambda i, j: (0, j)),    # bias tile
                ],
                out_specs=pl.BlockSpec((tm, tn), lambda i, j: (i, j)),
                scratch_shapes=[pltpu.VMEM((tm, Dp), jnp.float32)],  # cached y
            ),
            compiler_params=pltpu.CompilerParams(
                # j carries the cached-y scratch -> must be "arbitrary".
                dimension_semantics=("parallel", "arbitrary"),
                vmem_limit_bytes=48 * 1024 * 1024,
            ),
        )(x2, gamma2, beta2, w2, b2)

    if (Mp, Dp) != (M, D):
        out = out[:M, :D]
    return out.reshape(B, N, D)


def prenorm_linear_ref(x, gamma, beta, w, b, eps=1e-5):
    """Pure-JAX reference matching PyTorch: fn(LayerNorm(x)) with fn = Linear."""
    mean = jnp.mean(x, axis=-1, keepdims=True)
    var = jnp.mean((x - mean) ** 2, axis=-1, keepdims=True)
    xn = (x - mean) / jnp.sqrt(var + eps)
    y = xn * gamma + beta
    return jnp.einsum("bnd,de->bne", y, w) + b


if __name__ == "__main__":
    key = jax.random.PRNGKey(0)
    B, N, D = 2, 8, 32

    kx, kw, kb = jax.random.split(key, 3)
    x = jax.random.normal(kx, (B, N, D), dtype=jnp.float32)

    # LayerNorm params: PyTorch default init (weight=1, bias=0)
    gamma = jnp.ones((D,), dtype=jnp.float32)
    beta = jnp.zeros((D,), dtype=jnp.float32)

    # fn = Linear(D, D): deterministic random init, stored (D_in, D_out)
    # (equivalent to PyTorch's x @ weight.T with weight (D_out, D_in)).
    w = jax.random.normal(kw, (D, D), dtype=jnp.float32) * (1.0 / jnp.sqrt(D))
    b = jax.random.normal(kb, (D,), dtype=jnp.float32) * 0.01

    out = prenorm_linear(x, gamma, beta, w, b)
    out = jax.block_until_ready(out)

    ref = prenorm_linear_ref(x, gamma, beta, w, b)
    assert out.shape == (B, N, D)
    assert jnp.allclose(out, ref, atol=1e-4, rtol=1e-4), "mismatch vs reference"

    print("KERNEL_OK")
</pallas_src>

<mosaic_0001>
module attributes {stable_mosaic.version = 11 : i64} {
  func.func @prenorm_linear_kernel(%arg0: i32, %arg1: memref<8x128xf32, #tpu.memory_space<vmem>>, %arg2: memref<1x128xf32, #tpu.memory_space<vmem>>, %arg3: memref<1x128xf32, #tpu.memory_space<vmem>>, %arg4: memref<128x128xf32, #tpu.memory_space<vmem>>, %arg5: memref<1x128xf32, #tpu.memory_space<vmem>>, %arg6: memref<8x128xf32, #tpu.memory_space<vmem>>) attributes {dimension_semantics = [#tpu.dimension_semantics<parallel>], iteration_bounds = array<i64: 2>, scalar_prefetch = 0 : i64, scratch_operands = 0 : i64, tpu.core_type = #tpu.core_type<tc>, window_params = [{transform_indices = @transform_0, window_bounds = array<i64: 8, 128>}, {pipeline_mode = #tpu.pipeline_mode<synchronous>, transform_indices = @transform_1, window_bounds = array<i64: 1, 128>}, {pipeline_mode = #tpu.pipeline_mode<synchronous>, transform_indices = @transform_2, window_bounds = array<i64: 1, 128>}, {pipeline_mode = #tpu.pipeline_mode<synchronous>, transform_indices = @transform_3, window_bounds = array<i64: 128, 128>}, {pipeline_mode = #tpu.pipeline_mode<synchronous>, transform_indices = @transform_4, window_bounds = array<i64: 1, 128>}, {transform_indices = @transform_5, window_bounds = array<i64: 8, 128>}]} {
    %c0 = arith.constant 0 : index
    %c0_0 = arith.constant 0 : index
    %0 = vector.load %arg1[%c0, %c0_0] : memref<8x128xf32, #tpu.memory_space<vmem>>, vector<8x128xf32>
    %c0_1 = arith.constant 0 : index
    %c0_2 = arith.constant 0 : index
    %1 = vector.load %arg2[%c0_1, %c0_2] : memref<1x128xf32, #tpu.memory_space<vmem>>, vector<1x128xf32>
    %c0_3 = arith.constant 0 : index
    %c0_4 = arith.constant 0 : index
    %2 = vector.load %arg3[%c0_3, %c0_4] : memref<1x128xf32, #tpu.memory_space<vmem>>, vector<1x128xf32>
    %cst = arith.constant dense<0.000000e+00> : vector<8xf32>
    %3 = vector.multi_reduction <add>, %0, %cst [1] : vector<8x128xf32> to vector<8xf32>
    %4 = vector.shape_cast %3 : vector<8xf32> to vector<8x1xf32>
    %cst_5 = arith.constant 3.125000e-02 : f32
    %5 = vector.broadcast %cst_5 : f32 to vector<8x1xf32>
    %6 = arith.mulf %4, %5 : vector<8x1xf32>
    %7 = vector.broadcast %6 : vector<8x1xf32> to vector<8x128xf32>
    %8 = arith.subf %0, %7 : vector<8x128xf32>
    %9 = tpu.iota {dimensions = array<i32: 1>} : vector<8x128xi32>
    %c32_i32 = arith.constant 32 : i32
    %10 = vector.broadcast %c32_i32 : i32 to vector<8x128xi32>
    %11 = arith.cmpi slt, %9, %10 : vector<8x128xi32>
    %cst_6 = arith.constant 0.000000e+00 : f32
    %12 = vector.broadcast %cst_6 : f32 to vector<8x128xf32>
    %13 = arith.select %11, %8, %12 : vector<8x128xi1>, vector<8x128xf32>
    %14 = arith.mulf %13, %13 : vector<8x128xf32>
    %cst_7 = arith.constant dense<0.000000e+00> : vector<8xf32>
    %15 = vector.multi_reduction <add>, %14, %cst_7 [1] : vector<8x128xf32> to vector<8xf32>
    %16 = vector.shape_cast %15 : vector<8xf32> to vector<8x1xf32>
    %cst_8 = arith.constant 3.125000e-02 : f32
    %17 = vector.broadcast %cst_8 : f32 to vector<8x1xf32>
    %18 = arith.mulf %16, %17 : vector<8x1xf32>
    %cst_9 = arith.constant 9.99999974E-6 : f32
    %19 = vector.broadcast %cst_9 : f32 to vector<8x1xf32>
    %20 = arith.addf %18, %19 : vector<8x1xf32>
    %21 = math.rsqrt %20 : vector<8x1xf32>
    %22 = vector.broadcast %21 : vector<8x1xf32> to vector<8x128xf32>
    %23 = arith.mulf %13, %22 : vector<8x128xf32>
    %24 = vector.broadcast %1 : vector<1x128xf32> to vector<8x128xf32>
    %25 = arith.mulf %23, %24 : vector<8x128xf32>
    %26 = vector.broadcast %2 : vector<1x128xf32> to vector<8x128xf32>
    %27 = arith.addf %25, %26 : vector<8x128xf32>
    %c0_10 = arith.constant 0 : index
    %c0_11 = arith.constant 0 : index
    %28 = vector.load %arg4[%c0_10, %c0_11] : memref<128x128xf32, #tpu.memory_space<vmem>>, vector<128x128xf32>
    %cst_12 = arith.constant dense<0.000000e+00> : vector<8x128xf32>
    %29 = tpu.matmul %27, %28, %cst_12 {dimension_numbers = #tpu.dot_dimension_numbers<[1], [0], [0], [1], [0, 0, 1, 1], [], []>} : vector<8x128xf32>, vector<128x128xf32>, vector<8x128xf32> -> vector<8x128xf32>
    %c0_13 = arith.constant 0 : index
    %c0_14 = arith.constant 0 : index
    %30 = vector.load %arg5[%c0_13, %c0_14] : memref<1x128xf32, #tpu.memory_space<vmem>>, vector<1x128xf32>
    %31 = vector.broadcast %30 : vector<1x128xf32> to vector<8x128xf32>
    %32 = arith.addf %29, %31 : vector<8x128xf32>
    %c0_15 = arith.constant 0 : index
    %c0_16 = arith.constant 0 : index
    %33 = vector.load %arg6[%c0_15, %c0_16] : memref<8x128xf32, #tpu.memory_space<vmem>>, vector<8x128xf32>
    tpu.vector_store %arg6[%c0_15, %c0_16], %32 {strides = array<i32>} : memref<8x128xf32, #tpu.memory_space<vmem>>, vector<8x128xf32>,
    return
  }
  func.func @transform_0(%arg0: i32) -> (i32, i32) {
    %c0_i32 = arith.constant 0 : i32
    %c0_i32_0 = arith.constant 0 : i32
    return %arg0, %c0_i32 : i32, i32
  }
  func.func @transform_1(%arg0: i32) -> (i32, i32) {
    %c0_i32 = arith.constant 0 : i32
    %c0_i32_0 = arith.constant 0 : i32
    %c0_i32_1 = arith.constant 0 : i32
    return %c0_i32, %c0_i32_0 : i32, i32
  }
  func.func @transform_2(%arg0: i32) -> (i32, i32) {
    %c0_i32 = arith.constant 0 : i32
    %c0_i32_0 = arith.constant 0 : i32
    %c0_i32_1 = arith.constant 0 : i32
    return %c0_i32, %c0_i32_0 : i32, i32
  }
  func.func @transform_3(%arg0: i32) -> (i32, i32) {
    %c0_i32 = arith.constant 0 : i32
    %c0_i32_0 = arith.constant 0 : i32
    %c0_i32_1 = arith.constant 0 : i32
    return %c0_i32, %c0_i32_0 : i32, i32
  }
  func.func @transform_4(%arg0: i32) -> (i32, i32) {
    %c0_i32 = arith.constant 0 : i32
    %c0_i32_0 = arith.constant 0 : i32
    %c0_i32_1 = arith.constant 0 : i32
    return %c0_i32, %c0_i32_0 : i32, i32
  }
  func.func @transform_5(%arg0: i32) -> (i32, i32) {
    %c0_i32 = arith.constant 0 : i32
    %c0_i32_0 = arith.constant 0 : i32
    return %arg0, %c0_i32 : i32, i32
  }
}

</mosaic_0001>

<bundles_post_ra>
// kernel: tpu_custom_call.1
= control target key start
LH: loop header
LB: loop body
LE: loop exit
PB: predicated region body
PF: predicated region fallthrough
CT: control target
= control target key end

     0   :  { %10 = vsyncpa [#allocation3], 0  ;;  %s1009_s0 = inlined_call_operand.hbm [shape: f32[16,128], index: 0, kind: input, shape index: {}]   ;;  %s1010_s1 = inlined_call_operand.vmem [shape: f32[1,128], index: 1, kind: input, shape index: {}]   ;;  %s1011_s2 = inlined_call_operand.vmem [shape: f32[1,128], index: 2, kind: input, shape index: {}]   ;;  %s1012_s3 = inlined_call_operand.hbm [shape: f32[128,128], index: 3, kind: input, shape index: {}]   ;;  %s1013_s4 = inlined_call_operand.vmem [shape: f32[1,128], index: 4, kind: input, shape index: {}]   ;;  %s1014_s5 = inlined_call_operand.hbm [shape: f32[16,128], index: 5, kind: output, shape index: {}]  }
   0x1   :  { %12 = vsyncpa [#allocation3 + $0x1], 0 }
   0x2   :  { %13 = vsyncpa [#allocation6], 0 }
   0x3   :  { %14 = vsyncpa [#allocation4], 0 }
   0x4   :  { %16 = vsyncpa [#allocation4 + $0x1], 0  ;;  %s800_s18 = smov 0   ;;  %s802_s19 = smov 0  }
   0x5   :  { %s804_s20 = smov 0   ;;  %s806_s21 = smov 0  }
   0x6 LB: > { %s821_s22 = sadd.s32 4294967295, %s760_s21   ;;  %s475_s23 = sadd.s32 4294967294, %s760_s21   ;;  %s760_s21 = sphi %s806_s21, %s1034_s21   ;;  %s756_s20 = sphi %s804_s20, %s1033_s20   ;;  %s752_s19 = sphi %s802_s19, %s1032_s19   ;;  %s748_s18 = sphi %s800_s18, %s1031_s18  }
   0x7   : > { %p42_p0 = scmp.ne.s32.totalorder %s752_s19, %s748_s18  ;;  %p1015_p1 = scmp.eq.s32.totalorder %s821_s22, 0 }
   0x8   : > { %p156_p3 = scmp.eq.s32.totalorder %s475_s23, 1  ;;  %p476_p5 = scmp.ge.s32.totalorder %s760_s21, 1 }
   0x9   : > { %p830_p4 = por %p1015_p1, %p42_p0  ;;  %p163_p7 = scmp.lt.s32.totalorder %s760_s21, 3 }
   0xa   : > { %p835_p6 = por %p156_p3, %p42_p0  ;;  %s762_s27 = smov [#allocation5]  }
   0xb   : > { %s1018_s24 = scalar_select %p830_p4, 1, 0 }
   0xc   : > { %s1019_s25 = scalar_select %p835_p6, 1, 0 }
   0xd   : > { %p840_p8 = pnand %p476_p5, %p163_p7  ;;  %s181_s28 = sshll.u32 %s762_s27, 4  ;;  %s844_s28 = int_to_ptr.vmem [resolvable:$true] %s181_s28 }
   0xe   : > { %s856_s30 = sadd.s32 1, %s760_s21   ;;  %s29_s6 = sadd.s32 1, %s756_s20 }
   0xf   : > { %s1020_s26 = scalar_select %p840_p8, 1, 0 }
  0x10   : > { %p576_p9 = pneg %p840_p8  ;;  %s26_s7 = ssub.s32 %s760_s21, %s856_s30 }
  0x11   : > { %s632_s10 = scalar_lea.hbm %s1012_s3, 2048 }
  0x12   : > { %p851_p11 = pnand %p576_p9, %p1015_p1  ;;  %p633_p12 = scmp.ne.s32.totalorder %s1012_s3, %s632_s10 }
  0x13   : > { %p639_p5 = scmp.lt.u32.totalorder %s632_s10, %s1012_s3 }
  0x14   : > { %p634_p13 = pneg %p851_p11 }
  0x16   : > { %p635_p0 = pnand %p634_p13, %p633_p12 }
  0x18   : > { %p636_p3 = pneg %p635_p0 }
  0x1a   : > { %p641_p7 = pnand %p639_p5, %p636_p3 }
  0x1c   : > { %644 = shalt.err (!%p641_p7)
}
  0x1d   : > { %s645_s15 = scalar_lea.vmem %s844_s28, 2048  ;;  %p653_p2 = scmp.lt.s32.totalorder %s844_s28, %s844_s28 }
  0x1e   : > { %p646_p9 = scmp.ne.s32.totalorder %s844_s28, %s645_s15  ;;  %p654_p6 = scmp.lt.s32.totalorder %s645_s15, %s645_s15 }
  0x20   : > { %p648_p10 = pnand %p646_p9, %p634_p13  ;;  %p655_p4 = por %p654_p6, %p653_p2 }
  0x22   : > { %p649_p1 = pneg %p648_p10 }
  0x24   : > { %p656_p8 = pnand %p655_p4, %p649_p1 }
  0x26   : > { %659 = shalt.err (!%p656_p8)
}
  0x27   : > { %s763_s16 = smov 128   ;;  %s764_s17 = smov 8  }
  0x28   : > { %579 = dma.hbm_to_vmem [thread:$0]  (!%p851_p11), %s1012_s3, 2048, %s844_s28, [#allocation6], %s763_s16, %s763_s16, %s764_s17  }
  0x29   : > { %p27_p2 = scmp.eq.s32.totalorder %s26_s7, 0  ;;  %p36_p1 = scmp.ne.s32.totalorder %s756_s20, %s752_s19 }
  0x2a   : > { %p37_p4 = scmp.eq.s32.totalorder %s760_s21, 0  ;;  %p589_p6 = scmp.lt.s32.totalorder %s760_s21, 2 }
  0x2b   : > { %s887_s8 = scalar_select %p27_p2, %s756_s20, %s29_s6  }
  0x2c   : > { %p38_p8 = por %p37_p4, %p36_p1  ;;  %p1022_p10 = scmp.eq.s32.totalorder %s821_s22, 1 }
  0x2d   : > { %s198_s10 = sand.u32 1, %s756_s20   ;;  %s480_s11 = sshll.u32 %s760_s21, 7 }
  0x2e   : > { %p891_p12 = por %p1022_p10, %p36_p1  ;;  %s479_s12 = sshll.u32 %s198_s10, 3 }
  0x2f   : > { %s900_s14 = scalar_lea.hbm %s1009_s0, %s480_s11  ;;  %s202_s28 = scalar_lea.vmem [#allocation2], %s479_s12 }
  0x30   : > { %s209_s6 = sshll.u32 %s202_s28, 4  ;;  %p902_p11 = pnand %p589_p6, %p38_p8  ;;  %s906_s6 = int_to_ptr.vmem [resolvable:$true] %s209_s6 }
  0x31   : > { %s199_s15 = scalar_lea.sflag [#allocation3], %s198_s10  ;;  %s660_s16 = scalar_lea.hbm %s900_s14, 128 }
  0x32   : > { %p661_p13 = scmp.ne.s32.totalorder %s900_s14, %s660_s16  ;;  %p662_p0 = pneg %p902_p11 }
  0x33   : > { %s665_s27 = scalar_lea.hbm %s1009_s0, 256  ;;  %p666_p7 = scmp.lt.u32.totalorder %s900_s14, %s1009_s0 }
  0x34   : > { %p663_p3 = pnand %p662_p0, %p661_p13  ;;  %p667_p9 = scmp.lt.u32.totalorder %s665_s27, %s660_s16 }
  0x35   : > { %p669_p1 = scmp.lt.u32.totalorder %s660_s16, %s900_s14 }
  0x36   : > { %p664_p5 = pneg %p663_p3  ;;  %p668_p2 = por %p667_p9, %p666_p7 }
  0x38   : > { %p670_p4 = por %p669_p1, %p668_p2 }
  0x3a   : > { %p671_p6 = pnand %p670_p4, %p664_p5 }
  0x3c   : > { %674 = shalt.err (!%p671_p6)
}
  0x3d   : > { %s675_s10 = scalar_lea.vmem %s906_s6, 128  ;;  %s765_s29 = smov [#allocation2]  }
  0x3e   : > { %p676_p8 = scmp.ne.s32.totalorder %s906_s6, %s675_s10  ;;  %s680_s13 = sshll.u32 %s765_s29, 4  ;;  %s681_s13 = int_to_ptr.vmem [resolvable:$false] %s680_s13 }
  0x3f   : > { %s682_s28 = scalar_lea.vmem %s681_s13, 256  ;;  %p683_p3 = scmp.lt.s32.totalorder %s906_s6, %s681_s13 }
  0x40   : > { %p678_p10 = pnand %p676_p8, %p662_p0  ;;  %p684_p7 = scmp.lt.s32.totalorder %s682_s28, %s675_s10 }
  0x42   : > { %p679_p13 = pneg %p678_p10  ;;  %p685_p9 = por %p684_p7, %p683_p3 }
  0x44   : > { %p686_p2 = pnand %p685_p9, %p679_p13 }
  0x46   : > { %689 = shalt.err (!%p686_p2)
}
  0x47   : > { %583 = dma.hbm_to_vmem [thread:$0]  (!%p902_p11), %s900_s14, 128, %s906_s6, %s199_s15  }
  0x48   : > { %p1025_p5 = scmp.ne.s32.totalorder %s1020_s26, 0 }
  0x49   : > { %s936_s16 = sand.u32 (!%p1025_p5), 1, %s752_s19   ;;  %p1026_p0 = scmp.ne.s32.totalorder (!%p1025_p5), %s1018_s24, 0 }
  0x4a   : > { %218 = sbr.rel (%p1025_p5) target bundleno = 626 (0x272), region = 40  ;;  %s482_s17 = sshll.u32 (!%p1025_p5), %s936_s16, 3 }
  0x4b   : > { %s221_s23 = scalar_lea.sflag (!%p1025_p5), [#allocation3], %s936_s16  ;;  %s224_s27 = scalar_lea.vmem (!%p1025_p5), [#allocation2], %s482_s17 }
  0x51   : > { %735 = dma.done.wait (%p1026_p0), %s221_s23, 128  }
  0x52   : > { %737 = vsyncadd (%p1026_p0), %s221_s23, 4294967168  ;;  %p1027_p11 = scmp.eq.s32.totalorder %s821_s22, 0 }
  0x54   : > { %739 = dma.done.wait (%p1027_p11), [#allocation6], 2048   ;;  %p1028_p1 = pmov %p1027_p11 }
  0x55   : > { %v255_v0 = vld [vmem:[%s224_s27] sm:$0xff]  ;;  %v287_v1 = vld [vmem:[#allocation5] sm:$0xff]  ;;  %v288_v2 = vld [vmem:[#allocation5 + $0x8] sm:$0xff]  ;;  %v766_v4 = vmov 0.0|0.0   ;;  %v262_v11 = vlaneseq  ;;  %vm767_vm1 = vmmov 0   ;;  %v768_v26 = vmov 0.0  }
  0x56   : > { %741 = vsyncadd (%p1028_p1), [#allocation6], 4294965248  ;;  %258 = vadd.xlane.f32.xlu0 %v255_v0  ;;  %v289_v3 = vld [vmem:[#allocation5 + $0x10] sm:$0xff]  ;;  %544 = vmatprep.subr.bf16.mxu0 %v766_v4  ;;  %v545_v5 = vpack.c.bf16 %v288_v2, %v287_v1  ;;  %v290_v6 = vld [vmem:[#allocation5 + $0x18] sm:$0xff]  ;;  %s489_s11 = sshll.u32 %s821_s22, 7  ;;  %s254_s12 = scalar_lea.vmem [#allocation7], %s482_s17 }
  0x57   : > { %v548_v7 = vpack.c.bf16 %v290_v6, %v289_v3  ;;  %v291_v8 = vld [vmem:[#allocation5 + $0x20] sm:$0xff]  ;;  %v292_v9 = vld [vmem:[#allocation5 + $0x28] sm:$0xff]  ;;  %v263_v12 = vand.u32 127, %v262_v11  ;;  %v293_v18 = vld [vmem:[#allocation5 + $0x30] sm:$0xff]  ;;  %541 = vmatprep.mubr.msk.f32.mxu0 %vm767_vm1, %v768_v26  ;;  %s395_s10 = sshll.u32 %s254_s12, 4  ;;  %s965_s28 = scalar_lea.hbm %s1014_s5, %s489_s11  ;;  %s967_s10 = int_to_ptr.vmem [resolvable:$true] %s395_s10 }
  0x58   : > { %546 = vmatpush3.bf16.msra.mxu0 %v545_v5  ;;  %v551_v10 = vpack.c.bf16 %v292_v9, %v291_v8  ;;  %v294_v19 = vld [vmem:[#allocation5 + $0x38] sm:$0xff]  ;;  %v295_v21 = vld [vmem:[#allocation5 + $0x40] sm:$0xff]  ;;  %v296_v22 = vld [vmem:[#allocation5 + $0x48] sm:$0xff]  ;;  %s382_s23 = scalar_lea.sflag [#allocation4], %s936_s16  ;;  %s690_s27 = scalar_lea.vmem %s967_s10, 128 }
  0x59   : > { %547 = vmatprep.subr.bf16.mxu0 %v766_v4  ;;  %vm264_vm0 = vcmp.lt.s32.totalorder %v263_v12, 32  ;;  %v554_v20 = vpack.c.bf16 %v294_v19, %v293_v18  ;;  %v557_v23 = vpack.c.bf16 %v296_v22, %v295_v21  ;;  %v297_v24 = vld [vmem:[#allocation5 + $0x50] sm:$0xff]  ;;  %v298_v25 = vld [vmem:[#allocation5 + $0x58] sm:$0xff]  ;;  %v299_v28 = vld [vmem:[#allocation5 + $0x60] sm:$0xff]  ;;  %p691_p4 = scmp.ne.s32.totalorder %s967_s10, %s690_s27  ;;  %s769_s22 = smov [#allocation7]  }
  0x5a   : > { %v560_v27 = vpack.c.bf16 %v298_v25, %v297_v24  ;;  %v300_v29 = vld [vmem:[#allocation5 + $0x68] sm:$0xff]  ;;  %v301_v31 = vld [vmem:[#allocation5 + $0x70] sm:$0xff]  ;;  %v302_v32 = vld [vmem:[#allocation5 + $0x78] sm:$0xff]  ;;  %s694_s17 = sshll.u32 %s769_s22, 4  ;;  %s695_s17 = int_to_ptr.vmem [resolvable:$false] %s694_s17 }
  0x5b   : > { %v563_v30 = vpack.c.bf16 %v300_v29, %v299_v28  ;;  %v566_v33 = vpack.c.bf16 %v302_v32, %v301_v31  ;;  %v485_v38 = vld [vmem:[%s1010_s1] ss:$0 sm:$0xff]  ;;  %p692_p6 = pnand %p691_p4, %p891_p12  ;;  %s696_s24 = scalar_lea.vmem %s695_s17, 256 }
  0x5c   : > { %549 = vmatpush3.bf16.msra.mxu0 %v548_v7  ;;  %v486_v40 = vld [vmem:[%s1011_s2] ss:$0 sm:$0xff]  ;;  %p697_p10 = scmp.lt.s32.totalorder %s967_s10, %s695_s17  ;;  %p698_p13 = scmp.lt.s32.totalorder %s696_s24, %s690_s27 }
  0x5d   : > { %550 = vmatprep.subr.bf16.mxu0 %v766_v4  ;;  %v487_v43 = vld [vmem:[%s1013_s4] ss:$0 sm:$0xff]  ;;  %p693_p8 = pneg %p692_p6 }
  0x5e   : > { %p699_p3 = por %p698_p13, %p697_p10 }
  0x60   : > { %552 = vmatpush3.bf16.msra.mxu0 %v551_v10  ;;  %p700_p7 = pnand %p699_p3, %p693_p8 }
  0x61   : > { %553 = vmatprep.subr.bf16.mxu0 %v766_v4 }
  0x64   : > { %555 = vmatpush3.bf16.msra.mxu0 %v554_v20 }
  0x65   : > { %556 = vmatprep.subr.bf16.mxu0 %v766_v4 }
  0x68   : > { %558 = vmatpush3.bf16.msra.mxu0 %v557_v23 }
  0x69   : > { %559 = vmatprep.subr.bf16.mxu0 %v766_v4 }
  0x6c   : > { %561 = vmatpush3.bf16.msra.mxu0 %v560_v27 }
  0x6d   : > { %562 = vmatprep.subr.bf16.mxu0 %v766_v4 }
  0x70   : > { %564 = vmatpush3.bf16.msra.mxu0 %v563_v30 }
  0x71   : > { %565 = vmatprep.subr.bf16.mxu0 %v766_v4 }
  0x74   : > { %567 = vmatpush3.bf16.msra.mxu0 %v566_v33 }
  0xe3   : > { %v259_v13 = vpop.xlane.xlu0 %258 }
  0xe4   : > { %v260_v14 = vmul.f32 0.03125, %v259_v13 }
  0xe6   : > { %v261_v15 = vsub.f32 %v255_v0, %v260_v14 }
  0xe8   : > { %v265_v16 = vsel %vm264_vm0, %v261_v15, 0.0 }
  0xe9   : > { %v266_v17 = vmul.f32 %v265_v16, %v265_v16 }
  0xeb   : > { %267 = vadd.xlane.f32.xlu0 %v266_v17 }
 0x178   : > { %v268_v34 = vpop.xlane.xlu0 %267 }
 0x179   : > { %v269_v35 = vmul.f32 0.03125, %v268_v34 }
 0x17b   : > { %v270_v36 = vadd.f32 1e-05, %v269_v35 }
 0x17d   : > { %630 = vrsqrt.f32 %v270_v36 }
 0x187   : > { %v631_v37 = vpop.eup %630 }
 0x188   : > { %v272_v39 = vmul.f32 %v631_v37, %v265_v16 }
 0x18a   : > { %v279_v41 = vmul.f32 %v485_v38, %v272_v39 }
 0x18c   : > { %v286_v42 = vadd.f32 %v486_v40, %v279_v41 }
 0x18e   : > { %542 = vmatmul.mubr.f32.vlgmr.msra.gmra.mrb[0].mxu0 %v286_v42 }
 0x261   : > { %v376_v44 = vpop.f32.mrb[0].mxu0 }
 0x262   : > { %v377_v45 = vadd.f32 %v487_v43, %v376_v44  ;;  %v543_v46 = vpop.f32.mrb[1].mxu0 }
 0x264   : > { %380 = vst [vmem:[%s254_s12] sm:$0xff] %v377_v45 }
 0x265   : > { %703 = shalt.err (!%p700_p7)
}
 0x266   : > { %s704_s16 = scalar_lea.hbm %s965_s28, 128  ;;  %s708_s6 = scalar_lea.hbm %s1014_s5, 256 }
 0x267   : > { %p705_p9 = scmp.ne.s32.totalorder %s965_s28, %s704_s16  ;;  %p709_p0 = scmp.lt.u32.totalorder %s965_s28, %s1014_s5 }
 0x268   : > { %p710_p11 = scmp.lt.u32.totalorder %s708_s6, %s704_s16  ;;  %p712_p4 = scmp.lt.u32.totalorder %s704_s16, %s965_s28 }
 0x269   : > { %p706_p2 = pnand %p705_p9, %p891_p12 }
 0x26a   : > { %p711_p1 = por %p710_p11, %p709_p0 }
 0x26b   : > { %p707_p5 = pneg %p706_p2 }
 0x26c   : > { %p713_p6 = por %p712_p4, %p711_p1 }
 0x26e   : > { %p714_p8 = pnand %p713_p6, %p707_p5 }
 0x270   : > { %717 = shalt.err (!%p714_p8)
}
 0x271   : > { %574 = dma.vmem_to_hbm [thread:$0]  (%p891_p12), %s967_s10, 128, %s965_s28, %s382_s23  }
 0x272 PF: > { %s407_s11 = sand.u32 1, %s748_s18   ;;  %p1029_p10 = scmp.ne.s32.totalorder %s1019_s25, 0 }
 0x273   : > { %p1030_p13 = scmp.ge.s32.totalorder %s760_s21, 2  ;;  %s408_s12 = scalar_lea.sflag [#allocation4], %s407_s11 }
 0x275   : > { %p585_p3 = pnand %p1030_p13, %p1029_p10 }
 0x277   : > { %743 = dma.done.wait (!%p585_p3), %s408_s12, 128  }
 0x278   : > { %745 = vsyncadd (!%p585_p3), %s408_s12, 4294967168  ;;  %p19_p7 = scmp.ge.s32.totalorder %s856_s30, 4   ;;  %s1031_s18 = smov %s752_s19 }
 0x279   : > { %s1032_s19 = smov %s756_s20  ;;  %s1033_s20 = smov %s887_s8 }
 0x27a   : > { %s1034_s21 = smov %s856_s30  ;;  %21 = sbr.rel (!%p19_p7) target bundleno = 6 (0x6), region = 89 }
 0x281   :  { %413 = vsyncpa [#allocation3], 1 }
 0x282   :  { %415 = vsyncpa [#allocation3 + $0x1], 1 }
 0x283   :  { %416 = vsyncpa [#allocation6], 1 }
 0x284   :  { %417 = vsyncpa [#allocation4], 1 }
 0x285   :  { %419 = vsyncpa [#allocation4 + $0x1], 1 }

</bundles_post_ra>
